<compile_context>
chip_gen: v7x
topology: tpu7x:2x2x1
jax: 0.10.0
libtpu: 0.0.40
codegen_flags: <defaults>
</compile_context>

<pallas_src>
import jax
import jax.numpy as jnp
from jax.experimental import pallas as pl
from jax.experimental.pallas import tpu as pltpu


_SUBLANE = 8  # keep multi-block row tiles a multiple of the f32 sublane count


def _softmax_kernel(x_ref, o_ref):
    # Numerically-stable softmax over the last (class) axis of the tile.
    x = x_ref[...].astype(jnp.float32)
    m = jnp.max(x, axis=-1, keepdims=True)
    e = jnp.exp(x - m)
    s = jnp.sum(e, axis=-1, keepdims=True)
    # Exact divide: the approximate EUP reciprocal measurably perturbs the
    # probabilities (>1e-3 relative); the divide is noise for an HBM-bound op.
    o_ref[...] = (e / s).astype(o_ref.dtype)


def _round_up(x, m):
    return (x + m - 1) // m * m


def _vmem_capacity_bytes():
    try:
        return int(pltpu.get_tpu_info().vmem_capacity_bytes)  # 128 MiB v5e/v6e, 64 MiB v7x
    except Exception:  # no TPU visible (e.g. interpret mode on CPU)
        return 64 * 1024 * 1024  # conservative, v7x-safe


def _default_vmem_budget_bytes():
    # ~1/3 of physical VMEM for the double-buffered I/O tiles; the rest is
    # headroom for f32 intermediates and compiler scratch.
    return max(16 * 1024 * 1024, _vmem_capacity_bytes() // 3)


def _pick_row_tile(b, c, itemsize, vmem_budget_bytes):
    # Per-row VMEM cost: double-buffered input + output tiles in the I/O
    # dtype (2 bufs x 2 arrays) plus ~3 f32 intermediates (x_f32, e, result)
    # materialized by the kernel body.
    per_row = c * (4 * itemsize + 3 * 4)
    max_rows = max(_SUBLANE, vmem_budget_bytes // per_row)
    row_tile = min(max_rows, 1024)
    # v7x has 2 TensorCores: give the "parallel" batch axis >= 2 grid steps
    # for large batches so both cores issue DMA streams (each half-tile is
    # still >= 256 rows, so v5e/v6e per-step overhead stays negligible).
    if b >= 512:
        row_tile = min(row_tile, _round_up(pl.cdiv(b, 2), _SUBLANE))
    return max(_SUBLANE, (row_tile // _SUBLANE) * _SUBLANE)


def vivit_head_forward(x, *, row_tile=None, vmem_budget_bytes=None,
                       small_input_xla_fallback=False):
    """Pallas implementation of vivit_head.forward: softmax over the class axis.

    x: (batch, num_classes).  Matches PyTorch nn.Softmax() (dim=1 for 2-D).
    """
    b, c = x.shape
    itemsize = jnp.dtype(x.dtype).itemsize

    # Launch-overhead escape hatch for tiny heads (see TODO above).  Off by
    # default so the Pallas kernel is always the code under test.
    if small_input_xla_fallback and b * c <= _SUBLANE * 128:
        return jax.nn.softmax(x, axis=-1)

    if vmem_budget_bytes is None:
        vmem_budget_bytes = _default_vmem_budget_bytes()
    if row_tile is None:
        row_tile = _pick_row_tile(b, c, itemsize, vmem_budget_bytes)
    if row_tile >= b:
        row_tile = b  # single block; a full-dim block is exempt from the 8-row rule
    else:
        row_tile = max(_SUBLANE, (row_tile // _SUBLANE) * _SUBLANE)

    grid = (pl.cdiv(b, row_tile),)  # partial last block is masked by Pallas

    # VMEM limit consistent with actual usage (I/O double buffers + f32
    # intermediates), clamped to physical capacity.
    est_bytes = row_tile * c * (4 * itemsize + 3 * 4)
    vmem_limit_bytes = int(min(_vmem_capacity_bytes(),
                               max(32 * 1024 * 1024, 2 * est_bytes)))

    return pl.pallas_call(
        _softmax_kernel,
        out_shape=jax.ShapeDtypeStruct((b, c), x.dtype),
        grid=grid,
        # Class axis kept at the full array width: a block dim equal to the
        # full dim is exempt from the (8, 128) rule; non-128 widths just use
        # masked stores, which beats padding/slicing the tensor through HBM.
        in_specs=[pl.BlockSpec((row_tile, c), lambda i: (i, 0))],
        out_specs=pl.BlockSpec((row_tile, c), lambda i: (i, 0)),
        compiler_params=pltpu.CompilerParams(
            dimension_semantics=("parallel",),
            vmem_limit_bytes=vmem_limit_bytes,
        ),
        cost_estimate=pl.CostEstimate(
            flops=4 * b * c,
            transcendentals=b * c,
            bytes_accessed=2 * b * c * itemsize,
        ),
    )(x)


if __name__ == "__main__":
    # Shipped-size head input: a small batch of class scores.
    x = jax.random.normal(jax.random.PRNGKey(0), (8, 32), dtype=jnp.float32)
    out = jax.block_until_ready(vivit_head_forward(x))
    ref = jax.nn.softmax(x, axis=-1)
    assert out.shape == x.shape
    assert jnp.allclose(out, ref, atol=1e-5, rtol=1e-5)
    assert jnp.allclose(jnp.sum(out, axis=-1), 1.0, atol=1e-5)

    # Ragged multi-tile case: non-multiple-of-8 batch with a forced small row
    # tile to exercise the cdiv grid + masked partial last block, and a
    # non-multiple-of-128 class width to exercise masked stores.
    x2 = jax.random.normal(jax.random.PRNGKey(1), (20, 192), dtype=jnp.float32)
    out2 = jax.block_until_ready(vivit_head_forward(x2, row_tile=8))
    ref2 = jax.nn.softmax(x2, axis=-1)
    assert out2.shape == x2.shape
    assert jnp.allclose(out2, ref2, atol=1e-5, rtol=1e-5)
    assert jnp.allclose(jnp.sum(out2, axis=-1), 1.0, atol=1e-5)

    # bf16 inputs: compute in f32, store bf16 (same path, wider class dim).
    x3 = jax.random.normal(jax.random.PRNGKey(2), (16, 1000), dtype=jnp.bfloat16)
    out3 = jax.block_until_ready(vivit_head_forward(x3))
    ref3 = jax.nn.softmax(x3.astype(jnp.float32), axis=-1)
    assert out3.shape == x3.shape
    assert out3.dtype == jnp.bfloat16
    assert jnp.allclose(out3.astype(jnp.float32), ref3, atol=1e-2, rtol=1e-2)

    print("KERNEL_OK")
</pallas_src>

<mosaic_0001>
module attributes {stable_mosaic.version = 11 : i64} {
  func.func @_softmax_kernel(%arg0: i32, %arg1: memref<8x32xf32, #tpu.memory_space<vmem>>, %arg2: memref<8x32xf32, #tpu.memory_space<vmem>>) attributes {dimension_semantics = [#tpu.dimension_semantics<parallel>], iteration_bounds = array<i64: 1>, scalar_prefetch = 0 : i64, scratch_operands = 0 : i64, tpu.core_type = #tpu.core_type<tc>, window_params = [{transform_indices = @transform_0, window_bounds = array<i64: 8, 32>}, {transform_indices = @transform_1, window_bounds = array<i64: 8, 32>}]} {
    %c0 = arith.constant 0 : index
    %c0_0 = arith.constant 0 : index
    %0 = vector.load %arg1[%c0, %c0_0] : memref<8x32xf32, #tpu.memory_space<vmem>>, vector<8x32xf32>
    %cst = arith.constant dense<0xFF800000> : vector<8xf32>
    %1 = vector.multi_reduction <maximumf>, %0, %cst [1] : vector<8x32xf32> to vector<8xf32>
    %2 = vector.shape_cast %1 : vector<8xf32> to vector<8x1xf32>
    %3 = vector.broadcast %2 : vector<8x1xf32> to vector<8x32xf32>
    %4 = arith.subf %0, %3 : vector<8x32xf32>
    %5 = math.exp %4 : vector<8x32xf32>
    %cst_1 = arith.constant dense<0.000000e+00> : vector<8xf32>
    %6 = vector.multi_reduction <add>, %5, %cst_1 [1] : vector<8x32xf32> to vector<8xf32>
    %7 = vector.shape_cast %6 : vector<8xf32> to vector<8x1xf32>
    %8 = vector.broadcast %7 : vector<8x1xf32> to vector<8x32xf32>
    %9 = arith.divf %5, %8 : vector<8x32xf32>
    %c0_2 = arith.constant 0 : index
    %c0_3 = arith.constant 0 : index
    %10 = vector.load %arg2[%c0_2, %c0_3] : memref<8x32xf32, #tpu.memory_space<vmem>>, vector<8x32xf32>
    tpu.vector_store %arg2[%c0_2, %c0_3], %9 {strides = array<i32>} : memref<8x32xf32, #tpu.memory_space<vmem>>, vector<8x32xf32>,
    return
  }
  func.func @transform_0(%arg0: i32) -> (i32, i32) {
    %c0_i32 = arith.constant 0 : i32
    %c0_i32_0 = arith.constant 0 : i32
    return %arg0, %c0_i32 : i32, i32
  }
  func.func @transform_1(%arg0: i32) -> (i32, i32) {
    %c0_i32 = arith.constant 0 : i32
    %c0_i32_0 = arith.constant 0 : i32
    return %arg0, %c0_i32 : i32, i32
  }
}

</mosaic_0001>

<bundles_post_ra>
// kernel: tpu_custom_call.1
= control target key start
LH: loop header
LB: loop body
LE: loop exit
PB: predicated region body
PF: predicated region fallthrough
CT: control target
= control target key end

     0   :  { %6 = vsyncpa [#allocation3], 0  ;;  %s143_s0 = inlined_call_operand.hbm [shape: f32[8,32], index: 0, kind: input, shape index: {}]   ;;  %s144_s1 = inlined_call_operand.hbm [shape: f32[8,32], index: 1, kind: output, shape index: {}]  }
   0x1   :  { %7 = vsyncpa [#allocation4], 0  ;;  %s104_s6 = smov [#allocation2]   ;;  %s56_s10 = scalar_lea.hbm %s143_s0, 128 }
   0x2   :  { %s14_s7 = sshll.u32 %s104_s6, 4  ;;  %p57_p0 = scmp.ne.s32.totalorder %s143_s0, %s56_s10  ;;  %s15_s7 = int_to_ptr.vmem [resolvable:$true] %s14_s7 }
   0x3   :  { %p60_p1 = scmp.lt.u32.totalorder %s56_s10, %s143_s0 }
   0x5   :  { %p62_p2 = pnand %p60_p1, %p57_p0 }
   0x7   :  { %65 = shalt.err (!%p62_p2)
}
   0x8   :  { %s66_s15 = scalar_lea.vmem %s15_s7, 128  ;;  %p71_p4 = scmp.lt.s32.totalorder %s15_s7, %s15_s7 }
   0x9   :  { %p67_p3 = scmp.ne.s32.totalorder %s15_s7, %s66_s15  ;;  %p72_p5 = scmp.lt.s32.totalorder %s66_s15, %s66_s15 }
   0xb   :  { %p73_p6 = por %p72_p5, %p71_p4 }
   0xd   :  { %p74_p7 = pnand %p73_p6, %p67_p3 }
   0xf   :  { %77 = shalt.err (!%p74_p7)
}
  0x10   :  { %17 = dma.hbm_to_vmem [thread:$0]  %s143_s0, 128, %s15_s7, [#allocation3]  }
  0x11   :  { %100 = dma.done.wait [#allocation3], 128  }
  0x12   :  { %101 = vsyncadd [#allocation3], 4294967168  ;;  %vm22_vm0 = vcmask 261120   ;;  %v21_v0 = vld [vmem:[#allocation2] sm:$0xff]  ;;  %s105_s18 = smov [#allocation5]  }
  0x13   :  { %v23_v1 = vsel %vm22_vm0, %v21_v0, -inf  ;;  %s41_s19 = sshll.u32 %s105_s18, 4  ;;  %s42_s19 = int_to_ptr.vmem [resolvable:$true] %s41_s19 }
  0x14   :  { %24 = vmax.xlane.f32.xlu0 %v23_v1  ;;  %s78_s0 = scalar_lea.vmem %s42_s19, 128  ;;  %p83_p9 = scmp.lt.s32.totalorder %s42_s19, %s42_s19 }
  0x15   :  { %p79_p8 = scmp.ne.s32.totalorder %s42_s19, %s78_s0  ;;  %p84_p10 = scmp.lt.s32.totalorder %s78_s0, %s78_s0 }
  0x17   :  { %p85_p11 = por %p84_p10, %p83_p9 }
  0x19   :  { %p86_p12 = pnand %p85_p11, %p79_p8 }
  0xa1   :  { %v25_v2 = vpop.xlane.xlu0 %24 }
  0xa2   :  { %v26_v3 = vsub.f32 %v21_v0, %v25_v2 }
  0xa4   :  { %v27_v4 = vmul.f32 1.442695, %v26_v3 }
  0xa6   :  { %52 = vpow2.f32 %v27_v4 }
  0xb0   :  { %v53_v5 = vpop.eup %52 }
  0xb1   :  { %v29_v6 = vsel %vm22_vm0, %v53_v5, 0.0 }
  0xb2   :  { %30 = vadd.xlane.f32.xlu0 %v29_v6 }
 0x13f   :  { %v31_v7 = vpop.xlane.xlu0 %30 }
 0x140   :  { %54 = vrcp.f32 %v31_v7 }
 0x14a   :  { %v55_v8 = vpop.eup %54 }
 0x14b   :  { %v33_v9 = vmul.f32 %v55_v8, %v53_v5 }
 0x14d   :  { %34 = vst.msk [vmem:[#allocation5] sm:$0xff] %vm22_vm0, %v33_v9 }
 0x14e   :  { %89 = shalt.err (!%p86_p12)
}
 0x14f   :  { %s90_s22 = scalar_lea.hbm %s144_s1, 128 }
 0x150   :  { %p91_p13 = scmp.ne.s32.totalorder %s144_s1, %s90_s22  ;;  %p94_p0 = scmp.lt.u32.totalorder %s90_s22, %s144_s1 }
 0x152   :  { %p96_p1 = pnand %p94_p0, %p91_p13 }
 0x154   :  { %99 = shalt.err (!%p96_p1)
}
 0x155   :  { %44 = dma.vmem_to_hbm [thread:$0]  %s42_s19, 128, %s144_s1, [#allocation4]  }
 0x156   :  { %102 = dma.done.wait [#allocation4], 128  }
 0x157   :  { %103 = vsyncadd [#allocation4], 4294967168 }
 0x158   :  { %48 = vsyncpa [#allocation3], 1 }
 0x159   :  { %49 = vsyncpa [#allocation4], 1 }

</bundles_post_ra>
